<compile_context>
chip_gen: v5e
topology: v5e:2x2
jax: 0.10.0
libtpu: 0.0.40
codegen_flags: <defaults>
</compile_context>

<pallas_src>
import functools

import jax
import jax.numpy as jnp
from jax.experimental import pallas as pl
from jax.experimental.pallas import tpu as pltpu

_NEG_BIG = -1e30  # softmax mask value; avoids -inf/-inf NaN edge cases


def _out_lanes(action_size):
    """Lane-dense output width: >= 128 and wide enough for logits + value column."""
    return max(128, ((action_size + 1 + 127) // 128) * 128)


def _actor_critic_fused_kernel(x_ref,
                               w1_ref, b1_ref,
                               w2_ref, b2_ref,
                               w3_ref, b3_ref,
                               nmask_ref, vmask_ref,
                               out_ref):
    # bf16 operands feed the MXU natively on v5e/v6e/v7x; accumulate in f32.
    x = x_ref[...].astype(jnp.bfloat16)
    h = jnp.tanh(jnp.dot(x, w1_ref[...],
                         preferred_element_type=jnp.float32) + b1_ref[...])
    h = jnp.tanh(jnp.dot(h.astype(jnp.bfloat16), w2_ref[...],
                         preferred_element_type=jnp.float32) + b2_ref[...])
    z = jnp.dot(h.astype(jnp.bfloat16), w3_ref[...],
                preferred_element_type=jnp.float32) + b3_ref[...]
    # z: (tile, out_lanes) f32. cols [0, A): actor logits, col A: critic value, rest 0.

    # Softmax over actor columns only.  The precomputed additive mask (-1e30 on the
    # value/padding columns) replaces the per-step iota + compares + wheres.
    logits = z + nmask_ref[...]
    m = jnp.max(logits, axis=-1, keepdims=True)
    e = jnp.exp(logits - m)
    denom = jnp.sum(e, axis=-1, keepdims=True)
    probs = e / denom  # exact divide: EUP/VPU have slack; keeps sum(probs) == 1

    # Lane-dense slab: probs in cols [0, A), raw critic value in col A (probs there
    # is exactly 0 because that column was masked out of the softmax), zeros elsewhere.
    out_ref[...] = probs + z * vmask_ref[...]


@functools.partial(jax.jit, static_argnames=("batch_grid",))
def actor_critic_forward_slab(x, packed, batch_grid=1):
    """Returns the raw (B, out_lanes) f32 slab: probs in [:, :A], value in [:, A]."""
    B, S = x.shape
    out_lanes = packed["w3"].shape[1]
    assert B % batch_grid == 0, "batch must divide evenly across grid steps"
    tile = B // batch_grid

    def repl(a):
        # Constant index map -> block never changes -> not re-fetched across steps.
        return pl.BlockSpec(a.shape, lambda i: (0, 0))

    grid_spec = pltpu.PrefetchScalarGridSpec(
        num_scalar_prefetch=0,
        grid=(batch_grid,),
        in_specs=[
            pl.BlockSpec((tile, S), lambda i: (i, 0)),          # x (batch tiled)
            repl(packed["w1"]), repl(packed["b1"]),
            repl(packed["w2"]), repl(packed["b2"]),
            repl(packed["w3"]), repl(packed["b3"]),
            repl(packed["nmask"]), repl(packed["vmask"]),
        ],
        out_specs=pl.BlockSpec((tile, out_lanes), lambda i: (i, 0)),
    )

    # Single grid step on single-TC chips (v5e/v6e); "parallel" batch axis when we
    # deliberately emit one step per TensorCore (v7x).
    semantics = (pltpu.PARALLEL,) if batch_grid > 1 else (pltpu.ARBITRARY,)
    # TODO(synk): on v7x, if profiling shows one TensorCore idle with PARALLEL,
    # switch to pltpu.CORE_PARALLEL (grid size == number of TensorCores).

    return pl.pallas_call(
        _actor_critic_fused_kernel,
        out_shape=jax.ShapeDtypeStruct((B, out_lanes), jnp.float32),
        grid_spec=grid_spec,
        compiler_params=pltpu.CompilerParams(dimension_semantics=semantics),
    )(x,
      packed["w1"], packed["b1"],
      packed["w2"], packed["b2"],
      packed["w3"], packed["b3"],
      packed["nmask"], packed["vmask"])


def actor_critic_forward(x, packed, action_size, batch_grid=1):
    """Convenience wrapper returning (action_probs (B, A), state_value (B, 1)).

    Downstream PPO code should prefer `actor_critic_forward_slab` and index the slab
    in its consumer to avoid an extra slice pass over HBM.
    """
    slab = actor_critic_forward_slab(x, packed, batch_grid=batch_grid)
    return slab[:, :action_size], slab[:, action_size:action_size + 1]


def default_batch_grid(batch):
    """1 grid step on single-TC chips (v5e/v6e); one step per TensorCore on v7x."""
    try:
        kind = jax.devices()[0].device_kind.lower()
    except Exception:  # pragma: no cover - defensive
        kind = ""
    n = 2 if ("v7" in kind or "7x" in kind) else 1
    # Keep each batch tile 8-row aligned (sublane constraint) and evenly dividing B.
    while n > 1 and (batch % n != 0 or (batch // n) % 8 != 0):
        n -= 1
    return n


def init_params(key, state_size, action_size, hidsize1, hidsize2):
    """Deterministic synthetic init; weights stored as (in, out) for x @ W + b."""
    ks = jax.random.split(key, 12)

    def lin(kw, kb, fan_in, fan_out):
        # mimic torch default uniform(-1/sqrt(fan_in), 1/sqrt(fan_in))
        bound = 1.0 / jnp.sqrt(jnp.float32(fan_in))
        w = jax.random.uniform(kw, (fan_in, fan_out), jnp.float32, -bound, bound)
        b = jax.random.uniform(kb, (1, fan_out), jnp.float32, -bound, bound)
        return w, b

    wa1, ba1 = lin(ks[0], ks[1], state_size, hidsize1)
    wa2, ba2 = lin(ks[2], ks[3], hidsize1, hidsize2)
    wa3, ba3 = lin(ks[4], ks[5], hidsize2, action_size)
    wc1, bc1 = lin(ks[6], ks[7], state_size, hidsize1)
    wc2, bc2 = lin(ks[8], ks[9], hidsize1, hidsize2)
    wc3, bc3 = lin(ks[10], ks[11], hidsize2, 1)
    return dict(wa1=wa1, ba1=ba1, wa2=wa2, ba2=ba2, wa3=wa3, ba3=ba3,
                wc1=wc1, bc1=bc1, wc2=wc2, bc2=bc2, wc3=wc3, bc3=bc3)


def pack_params(p, action_size, weight_dtype=jnp.bfloat16):
    """One-time fusion of actor+critic weights into MXU-friendly padded bf16 blocks."""
    S, H1 = p["wa1"].shape
    H2 = p["wa2"].shape[1]
    out_lanes = _out_lanes(action_size)
    assert out_lanes >= action_size + 1

    # Layer 1: side-by-side concat -> x @ [W1a | W1c].
    w1 = jnp.concatenate([p["wa1"], p["wc1"]], axis=1).astype(weight_dtype)  # (S, 2H1)
    b1 = jnp.concatenate([p["ba1"], p["bc1"]], axis=1)                       # f32 (1, 2H1)

    # Layer 2: block-diagonal so actor/critic hidden states stay independent.
    w2 = jnp.zeros((2 * H1, 2 * H2), jnp.float32)
    w2 = w2.at[:H1, :H2].set(p["wa2"]).at[H1:, H2:].set(p["wc2"])
    w2 = w2.astype(weight_dtype)                                             # (2H1, 2H2)
    b2 = jnp.concatenate([p["ba2"], p["bc2"]], axis=1)                       # f32 (1, 2H2)

    # Layer 3: actor logits land in cols [0, A), critic value in col A, rest zero.
    w3 = jnp.zeros((2 * H2, out_lanes), jnp.float32)
    w3 = w3.at[:H2, :action_size].set(p["wa3"])
    w3 = w3.at[H2:, action_size:action_size + 1].set(p["wc3"])
    w3 = w3.astype(weight_dtype)                                             # (2H2, 128)
    b3 = jnp.zeros((1, out_lanes), jnp.float32)
    b3 = b3.at[:, :action_size].set(p["ba3"])
    b3 = b3.at[:, action_size:action_size + 1].set(p["bc3"])                 # f32 (1, 128)

    # Precomputed masks (hoisted out of the kernel's per-row compute).
    col = jnp.arange(out_lanes)[None, :]
    nmask = jnp.where(col < action_size, 0.0, _NEG_BIG).astype(jnp.float32)  # softmax mask
    vmask = jnp.where(col == action_size, 1.0, 0.0).astype(jnp.float32)      # value select

    return dict(w1=w1, b1=b1, w2=w2, b2=b2, w3=w3, b3=b3, nmask=nmask, vmask=vmask)


def reference_forward(x, p):
    h = jnp.tanh(x @ p["wa1"] + p["ba1"])
    h = jnp.tanh(h @ p["wa2"] + p["ba2"])
    probs = jax.nn.softmax(h @ p["wa3"] + p["ba3"], axis=-1)
    c = jnp.tanh(x @ p["wc1"] + p["bc1"])
    c = jnp.tanh(c @ p["wc2"] + p["bc2"])
    value = c @ p["wc3"] + p["bc3"]
    return probs, value


if __name__ == "__main__":
    # Small deterministic shapes: state_size=32, action_size=5 (flatland), small hiddens.
    B, S, A, H1, H2 = 16, 32, 5, 64, 32

    key = jax.random.PRNGKey(0)
    k_x, k_p = jax.random.split(key)
    x = jax.random.normal(k_x, (B, S), jnp.float32)
    params = init_params(k_p, S, A, H1, H2)
    packed = pack_params(params, A)

    bg = default_batch_grid(B)  # 1 on v5e/v6e, 2 on v7x
    probs, value = actor_critic_forward(x, packed, A, batch_grid=bg)
    jax.block_until_ready((probs, value))

    # Sanity-check against a pure-JAX f32 reference on the unfused weights.
    probs_ref, value_ref = reference_forward(x, params)
    assert probs.shape == (B, A) and value.shape == (B, 1)
    # bf16 weights with f32 accumulation: ~1e-2 relative error budget.
    assert jnp.allclose(value, value_ref, atol=3e-2, rtol=3e-2)
    assert jnp.allclose(probs, probs_ref, atol=3e-2, rtol=3e-2)
    # Exact softmax divide -> rows sum to 1 up to f32 rounding.
    assert jnp.allclose(jnp.sum(probs, axis=-1), 1.0, atol=1e-5)

    print("KERNEL_OK")
</pallas_src>

<mosaic_0001>
module attributes {stable_mosaic.version = 11 : i64} {
  func.func @_actor_critic_fused_kernel(%arg0: i32, %arg1: memref<16x32xf32, #tpu.memory_space<vmem>>, %arg2: memref<32x128xbf16, #tpu.memory_space<vmem>>, %arg3: memref<1x128xf32, #tpu.memory_space<vmem>>, %arg4: memref<128x64xbf16, #tpu.memory_space<vmem>>, %arg5: memref<1x64xf32, #tpu.memory_space<vmem>>, %arg6: memref<64x128xbf16, #tpu.memory_space<vmem>>, %arg7: memref<1x128xf32, #tpu.memory_space<vmem>>, %arg8: memref<1x128xf32, #tpu.memory_space<vmem>>, %arg9: memref<1x128xf32, #tpu.memory_space<vmem>>, %arg10: memref<16x128xf32, #tpu.memory_space<vmem>>) attributes {dimension_semantics = [#tpu.dimension_semantics<arbitrary>], iteration_bounds = array<i64: 1>, scalar_prefetch = 0 : i64, scratch_operands = 0 : i64, tpu.core_type = #tpu.core_type<tc>, window_params = [{transform_indices = @transform_0, window_bounds = array<i64: 16, 32>}, {pipeline_mode = #tpu.pipeline_mode<synchronous>, transform_indices = @transform_1, window_bounds = array<i64: 32, 128>}, {pipeline_mode = #tpu.pipeline_mode<synchronous>, transform_indices = @transform_2, window_bounds = array<i64: 1, 128>}, {pipeline_mode = #tpu.pipeline_mode<synchronous>, transform_indices = @transform_3, window_bounds = array<i64: 128, 64>}, {pipeline_mode = #tpu.pipeline_mode<synchronous>, transform_indices = @transform_4, window_bounds = array<i64: 1, 64>}, {pipeline_mode = #tpu.pipeline_mode<synchronous>, transform_indices = @transform_5, window_bounds = array<i64: 64, 128>}, {pipeline_mode = #tpu.pipeline_mode<synchronous>, transform_indices = @transform_6, window_bounds = array<i64: 1, 128>}, {pipeline_mode = #tpu.pipeline_mode<synchronous>, transform_indices = @transform_7, window_bounds = array<i64: 1, 128>}, {pipeline_mode = #tpu.pipeline_mode<synchronous>, transform_indices = @transform_8, window_bounds = array<i64: 1, 128>}, {transform_indices = @transform_9, window_bounds = array<i64: 16, 128>}]} {
    %c0 = arith.constant 0 : index
    %c0_0 = arith.constant 0 : index
    %0 = vector.load %arg1[%c0, %c0_0] : memref<16x32xf32, #tpu.memory_space<vmem>>, vector<16x32xf32>
    %1 = arith.truncf %0 : vector<16x32xf32> to vector<16x32xbf16>
    %c0_1 = arith.constant 0 : index
    %c0_2 = arith.constant 0 : index
    %2 = vector.load %arg2[%c0_1, %c0_2] : memref<32x128xbf16, #tpu.memory_space<vmem>>, vector<32x128xbf16>
    %cst = arith.constant dense<0.000000e+00> : vector<16x128xf32>
    %3 = tpu.matmul %1, %2, %cst {dimension_numbers = #tpu.dot_dimension_numbers<[1], [0], [0], [1], [0, 0, 1, 1], [], []>} : vector<16x32xbf16>, vector<32x128xbf16>, vector<16x128xf32> -> vector<16x128xf32>
    %c0_3 = arith.constant 0 : index
    %c0_4 = arith.constant 0 : index
    %4 = vector.load %arg3[%c0_3, %c0_4] : memref<1x128xf32, #tpu.memory_space<vmem>>, vector<1x128xf32>
    %5 = vector.broadcast %4 : vector<1x128xf32> to vector<16x128xf32>
    %6 = arith.addf %3, %5 : vector<16x128xf32>
    %7 = math.tanh %6 : vector<16x128xf32>
    %8 = arith.truncf %7 : vector<16x128xf32> to vector<16x128xbf16>
    %c0_5 = arith.constant 0 : index
    %c0_6 = arith.constant 0 : index
    %9 = vector.load %arg4[%c0_5, %c0_6] : memref<128x64xbf16, #tpu.memory_space<vmem>>, vector<128x64xbf16>
    %cst_7 = arith.constant dense<0.000000e+00> : vector<16x64xf32>
    %10 = tpu.matmul %8, %9, %cst_7 {dimension_numbers = #tpu.dot_dimension_numbers<[1], [0], [0], [1], [0, 0, 1, 1], [], []>} : vector<16x128xbf16>, vector<128x64xbf16>, vector<16x64xf32> -> vector<16x64xf32>
    %c0_8 = arith.constant 0 : index
    %c0_9 = arith.constant 0 : index
    %11 = vector.load %arg5[%c0_8, %c0_9] : memref<1x64xf32, #tpu.memory_space<vmem>>, vector<1x64xf32>
    %12 = vector.broadcast %11 : vector<1x64xf32> to vector<16x64xf32>
    %13 = arith.addf %10, %12 : vector<16x64xf32>
    %14 = math.tanh %13 : vector<16x64xf32>
    %15 = arith.truncf %14 : vector<16x64xf32> to vector<16x64xbf16>
    %c0_10 = arith.constant 0 : index
    %c0_11 = arith.constant 0 : index
    %16 = vector.load %arg6[%c0_10, %c0_11] : memref<64x128xbf16, #tpu.memory_space<vmem>>, vector<64x128xbf16>
    %cst_12 = arith.constant dense<0.000000e+00> : vector<16x128xf32>
    %17 = tpu.matmul %15, %16, %cst_12 {dimension_numbers = #tpu.dot_dimension_numbers<[1], [0], [0], [1], [0, 0, 1, 1], [], []>} : vector<16x64xbf16>, vector<64x128xbf16>, vector<16x128xf32> -> vector<16x128xf32>
    %c0_13 = arith.constant 0 : index
    %c0_14 = arith.constant 0 : index
    %18 = vector.load %arg7[%c0_13, %c0_14] : memref<1x128xf32, #tpu.memory_space<vmem>>, vector<1x128xf32>
    %19 = vector.broadcast %18 : vector<1x128xf32> to vector<16x128xf32>
    %20 = arith.addf %17, %19 : vector<16x128xf32>
    %c0_15 = arith.constant 0 : index
    %c0_16 = arith.constant 0 : index
    %21 = vector.load %arg8[%c0_15, %c0_16] : memref<1x128xf32, #tpu.memory_space<vmem>>, vector<1x128xf32>
    %22 = vector.broadcast %21 : vector<1x128xf32> to vector<16x128xf32>
    %23 = arith.addf %20, %22 : vector<16x128xf32>
    %cst_17 = arith.constant dense<0xFF800000> : vector<16xf32>
    %24 = vector.multi_reduction <maximumf>, %23, %cst_17 [1] : vector<16x128xf32> to vector<16xf32>
    %25 = vector.shape_cast %24 : vector<16xf32> to vector<16x1xf32>
    %26 = vector.broadcast %25 : vector<16x1xf32> to vector<16x128xf32>
    %27 = arith.subf %23, %26 : vector<16x128xf32>
    %28 = math.exp %27 : vector<16x128xf32>
    %cst_18 = arith.constant dense<0.000000e+00> : vector<16xf32>
    %29 = vector.multi_reduction <add>, %28, %cst_18 [1] : vector<16x128xf32> to vector<16xf32>
    %30 = vector.shape_cast %29 : vector<16xf32> to vector<16x1xf32>
    %31 = vector.broadcast %30 : vector<16x1xf32> to vector<16x128xf32>
    %32 = arith.divf %28, %31 : vector<16x128xf32>
    %c0_19 = arith.constant 0 : index
    %c0_20 = arith.constant 0 : index
    %33 = vector.load %arg9[%c0_19, %c0_20] : memref<1x128xf32, #tpu.memory_space<vmem>>, vector<1x128xf32>
    %34 = vector.broadcast %33 : vector<1x128xf32> to vector<16x128xf32>
    %35 = arith.mulf %20, %34 : vector<16x128xf32>
    %36 = arith.addf %32, %35 : vector<16x128xf32>
    %c0_21 = arith.constant 0 : index
    %c0_22 = arith.constant 0 : index
    %37 = vector.load %arg10[%c0_21, %c0_22] : memref<16x128xf32, #tpu.memory_space<vmem>>, vector<16x128xf32>
    tpu.vector_store %arg10[%c0_21, %c0_22], %36 {strides = array<i32>} : memref<16x128xf32, #tpu.memory_space<vmem>>, vector<16x128xf32>,
    return
  }
  func.func @transform_0(%arg0: i32) -> (i32, i32) {
    %c0_i32 = arith.constant 0 : i32
    %c0_i32_0 = arith.constant 0 : i32
    return %arg0, %c0_i32 : i32, i32
  }
  func.func @transform_1(%arg0: i32) -> (i32, i32) {
    %c0_i32 = arith.constant 0 : i32
    %c0_i32_0 = arith.constant 0 : i32
    %c0_i32_1 = arith.constant 0 : i32
    return %c0_i32, %c0_i32_0 : i32, i32
  }
  func.func @transform_2(%arg0: i32) -> (i32, i32) {
    %c0_i32 = arith.constant 0 : i32
    %c0_i32_0 = arith.constant 0 : i32
    %c0_i32_1 = arith.constant 0 : i32
    return %c0_i32, %c0_i32_0 : i32, i32
  }
  func.func @transform_3(%arg0: i32) -> (i32, i32) {
    %c0_i32 = arith.constant 0 : i32
    %c0_i32_0 = arith.constant 0 : i32
    %c0_i32_1 = arith.constant 0 : i32
    return %c0_i32, %c0_i32_0 : i32, i32
  }
  func.func @transform_4(%arg0: i32) -> (i32, i32) {
    %c0_i32 = arith.constant 0 : i32
    %c0_i32_0 = arith.constant 0 : i32
    %c0_i32_1 = arith.constant 0 : i32
    return %c0_i32, %c0_i32_0 : i32, i32
  }
  func.func @transform_5(%arg0: i32) -> (i32, i32) {
    %c0_i32 = arith.constant 0 : i32
    %c0_i32_0 = arith.constant 0 : i32
    %c0_i32_1 = arith.constant 0 : i32
    return %c0_i32, %c0_i32_0 : i32, i32
  }
  func.func @transform_6(%arg0: i32) -> (i32, i32) {
    %c0_i32 = arith.constant 0 : i32
    %c0_i32_0 = arith.constant 0 : i32
    %c0_i32_1 = arith.constant 0 : i32
    return %c0_i32, %c0_i32_0 : i32, i32
  }
  func.func @transform_7(%arg0: i32) -> (i32, i32) {
    %c0_i32 = arith.constant 0 : i32
    %c0_i32_0 = arith.constant 0 : i32
    %c0_i32_1 = arith.constant 0 : i32
    return %c0_i32, %c0_i32_0 : i32, i32
  }
  func.func @transform_8(%arg0: i32) -> (i32, i32) {
    %c0_i32 = arith.constant 0 : i32
    %c0_i32_0 = arith.constant 0 : i32
    %c0_i32_1 = arith.constant 0 : i32
    return %c0_i32, %c0_i32_0 : i32, i32
  }
  func.func @transform_9(%arg0: i32) -> (i32, i32) {
    %c0_i32 = arith.constant 0 : i32
    %c0_i32_0 = arith.constant 0 : i32
    return %arg0, %c0_i32 : i32, i32
  }
}

</mosaic_0001>

<bundles_post_ra>
// kernel: actor_critic_forward_slab.1
= control target key start
LH: loop header
LB: loop body
LE: loop exit
PB: predicated region body
PF: predicated region fallthrough
CT: control target
= control target key end

     0   :  { %s536_s0 = inlined_call_operand.vmem [shape: f32[16,32], index: 0, kind: input, shape index: {}]   ;;  %s537_s1 = inlined_call_operand.vmem [shape: bf16[32,128], index: 1, kind: input, shape index: {}]   ;;  %s538_s2 = inlined_call_operand.vmem [shape: f32[1,128], index: 2, kind: input, shape index: {}]   ;;  %s539_s3 = inlined_call_operand.vmem [shape: bf16[128,64], index: 3, kind: input, shape index: {}]   ;;  %s540_s4 = inlined_call_operand.vmem [shape: f32[1,64], index: 4, kind: input, shape index: {}]   ;;  %s541_s5 = inlined_call_operand.vmem [shape: bf16[64,128], index: 5, kind: input, shape index: {}]   ;;  %s542_s6 = inlined_call_operand.vmem [shape: f32[1,128], index: 6, kind: input, shape index: {}]   ;;  %s543_s7 = inlined_call_operand.vmem [shape: f32[1,128], index: 7, kind: input, shape index: {}]   ;;  %s544_s8 = inlined_call_operand.vmem [shape: f32[1,128], index: 8, kind: input, shape index: {}]   ;;  %s545_s9 = inlined_call_operand.hbm [shape: f32[16,128], index: 9, kind: output, shape index: {}]  }
   0x1   :  { %v354_v0 = vld [vmem:[%s537_s1 + $0x8] sm:$0xff]  ;;  %v353_v1 = vld [vmem:[%s537_s1] sm:$0xff]  ;;  %v362_v3 = vld [vmem:[%s539_s3 + $0x38] sm:$0xff] }
   0x2   :  { %v34_v2 = vld [vmem:[%s536_s0] sm:$0xff]  ;;  %67 = vmatpush.bf16.msra.mxu0 %v354_v0  ;;  %v35_v4 = vld [vmem:[%s536_s0 + $0x8] sm:$0xff]  ;;  %v361_v5 = vld [vmem:[%s539_s3 + $0x30] sm:$0xff]  ;;  %146 = vmatpush.bf16.msra.mxu1 %v362_v3 }
   0x3   :  { %14 = vsyncpa [#allocation3], 0  ;;  %v36_v6 = vpack.c.bf16 %v35_v4, %v34_v2  ;;  %vm57_vm0 = vcmask 261120   ;;  %v360_v7 = vld [vmem:[%s539_s3 + $0x28] sm:$0xff]  ;;  %v359_v8 = vld [vmem:[%s539_s3 + $0x20] sm:$0xff]  ;;  %vm199_vm1 = vcmask 523264  }
   0x4   :  { %v358_v9 = vld [vmem:[%s539_s3 + $0x18] sm:$0xff]  ;;  %v357_v10 = vld [vmem:[%s539_s3 + $0x10] sm:$0xff]  ;;  %v356_v11 = vld [vmem:[%s539_s3 + $0x8] sm:$0xff]  ;;  %s283_s0 = sshll.u32 %s545_s9, 4  ;;  %s418_s24 = smov 128   ;;  %s284_s0 = int_to_ptr.hbm [resolvable:$true] %s283_s0 }
   0x5   :  { %v355_v12 = vld [vmem:[%s539_s3] sm:$0xff]  ;;  %v366_v21 = vld [vmem:[%s541_s5 + $0x18] sm:$0xff]  ;;  %v365_v22 = vld [vmem:[%s541_s5 + $0x10] sm:$0xff]  ;;  %s419_s25 = smov 8  }
   0x6   :  { %68 = vmatpush.bf16.msra.mxu0 %v353_v1  ;;  %147 = vmatpush.bf16.msra.mxu1 %v361_v5  ;;  %v370_v14 = vld [vmem:[%s538_s2] ss:$0 sm:$0xff]  ;;  %v364_v23 = vld [vmem:[%s541_s5 + $0x8] sm:$0xff] }
   0x7   :  { %207 = vmatpush.bf16.msra.mxu2 %v366_v21  ;;  %v363_v24 = vld [vmem:[%s541_s5] sm:$0xff] }
   0x8   :  { %v371_v26 = vld [vmem:[%s540_s4] ss:$0 sm:$0xff] }
   0x9   :  { %303 = vmatmul.msk.bf16.vlgmr.msra.gmra.mxu0 %vm57_vm0, %v36_v6  ;;  %v372_v33 = vld [vmem:[%s542_s6] ss:$0 sm:$0xff] }
   0xa   :  { %148 = vmatpush.bf16.msra.mxu1 %v360_v7  ;;  %v374_v34 = vld [vmem:[%s543_s7] ss:$0 sm:$0xff]  ;;  %s417_s7 = smov [#allocation2]  }
   0xb   :  { %208 = vmatpush.bf16.msra.mxu2 %v365_v22  ;;  %v373_v57 = vld [vmem:[%s544_s8] ss:$0 sm:$0xff]  ;;  %s281_s8 = sshll.u32 %s417_s7, 4  ;;  %s282_s8 = int_to_ptr.vmem [resolvable:$true] %s281_s8 }
   0xe   :  { %149 = vmatpush.bf16.msra.mxu1 %v359_v8 }
   0xf   :  { %209 = vmatpush.bf16.msra.mxu2 %v364_v23 }
  0x12   :  { %150 = vmatpush.bf16.msra.mxu1 %v358_v9 }
  0x13   :  { %210 = vmatpush.bf16.msra.mxu2 %v363_v24 }
  0x16   :  { %151 = vmatpush.bf16.msra.mxu1 %v357_v10 }
  0x1a   :  { %152 = vmatpush.bf16.msra.mxu1 %v356_v11 }
  0x1e   :  { %153 = vmatpush.bf16.msra.mxu1 %v355_v12 }
  0x86   :  { %v70_v13 = vpop.f32.mrf.mxu0 }
  0x87   :  { %v71_v15 = vadd.f32 %v370_v14, %v70_v13 }
  0x89   :  { %375 = vtanh.f32 %v71_v15 }
  0x8e   :  { %v72_v16 = vpop.f32.mrf.mxu0 }
  0x8f   :  { %v73_v17 = vadd.f32 %v370_v14, %v72_v16  ;;  %v376_v18 = vpop.eup %375 }
  0x91   :  { %377 = vtanh.f32 %v73_v17 }
  0x97   :  { %v378_v19 = vpop.eup %377 }
  0x98   :  { %v77_v20 = vpack.c.bf16 %v378_v19, %v376_v18 }
  0x9a   :  { %154 = vmatmul.bf16.vlgmr.msra.gmra.mxu1 %v77_v20 }
 0x117   :  { %v155_v25 = vpop.f32.mrf.mxu1 }
 0x118   :  { %v156_v27 = vadd.f32 %v371_v26, %v155_v25 }
 0x11a   :  { %379 = vtanh.f32 %v156_v27 }
 0x11f   :  { %v157_v28 = vpop.f32.mrf.mxu1 }
 0x120   :  { %v158_v29 = vadd.f32 %v371_v26, %v157_v28  ;;  %v380_v30 = vpop.eup %379 }
 0x122   :  { %381 = vtanh.f32 %v158_v29 }
 0x128   :  { %v382_v31 = vpop.eup %381 }
 0x129   :  { %v162_v32 = vpack.c.bf16 %v382_v31, %v380_v30 }
 0x12b   :  { %352 = vmatmul.msk.bf16.vlgmr.msra.gmra.mxu2 %vm199_vm1, %v162_v32 }
 0x1ae   :  { %v212_v35 = vpop.f32.mrf.mxu2 }
 0x1af   :  { %v213_v36 = vadd.f32 %v372_v33, %v212_v35 }
 0x1b1   :  { %v221_v37 = vadd.f32 %v374_v34, %v213_v36  ;;  %v271_v0 = vmul.f32 %v373_v57, %v213_v36 }
 0x1b3   :  { %223 = vmax.xlane.f32.xlu0 %v221_v37 }
 0x1b6   :  { %v214_v38 = vpop.f32.mrf.mxu2 }
 0x1b7   :  { %v215_v39 = vadd.f32 %v372_v33, %v214_v38 }
 0x1b9   :  { %v222_v40 = vadd.f32 %v374_v34, %v215_v39  ;;  %v272_v11 = vmul.f32 %v373_v57, %v215_v39 }
 0x1bb   :  { %225 = vmax.xlane.f32.xlu0 %v222_v40 }
 0x226   :  { %v224_v41 = vpop.xlane.xlu0 %223 }
 0x227   :  { %v227_v42 = vsub.f32 %v221_v37, %v224_v41 }
 0x229   :  { %v229_v43 = vmul.f32 1.442695, %v227_v42 }
 0x22b   :  { %383 = vpow2.f32 %v229_v43 }
 0x22e   :  { %v226_v44 = vpop.xlane.xlu0 %225 }
 0x22f   :  { %v228_v45 = vsub.f32 %v222_v40, %v226_v44 }
 0x231   :  { %v384_v46 = vpop.eup %383  ;;  %v231_v47 = vmul.f32 1.442695, %v228_v45 }
 0x232   :  { %233 = vadd.xlane.f32.xlu1 %v384_v46 }
 0x233   :  { %385 = vpow2.f32 %v231_v47 }
 0x239   :  { %v386_v48 = vpop.eup %385 }
 0x23a   :  { %235 = vadd.xlane.f32.xlu1 %v386_v48 }
 0x2a5   :  { %v234_v49 = vpop.xlane.xlu1 %233 }
 0x2a6   :  { %387 = vrcp.f32 %v234_v49  ;;  %v248_v54 = vand.u32 2147483648, %v234_v49  ;;  %v246_v56 = vand.u32 2147483647, %v234_v49  ;;  %vm242_vm3 = vweird.f32 %v234_v49 }
 0x2a8   :  { %v249_v60 = vor.u32 1.1754944e-38, %v248_v54  ;;  %vm247_vm5 = vcmp.eq.f32.partialorder %v246_v56, 8.507059e+37 }
 0x2ac   :  { %v388_v50 = vpop.eup %387 }
 0x2ad   :  { %v238_v51 = vmul.f32 %v388_v50, %v234_v49  ;;  %v236_v52 = vpop.xlane.xlu1 %235  ;;  %vm243_vm2 = vweird.f32 %v388_v50 }
 0x2ae   :  { %389 = vrcp.f32 %v236_v52  ;;  %vm244_vm4 = vmor %vm242_vm3, %vm243_vm2  ;;  %v263_v3 = vand.u32 2147483648, %v236_v52  ;;  %v261_v5 = vand.u32 2147483647, %v236_v52  ;;  %vm257_vm7 = vweird.f32 %v236_v52 }
 0x2af   :  { %v239_v53 = vsub.f32 1.0, %v238_v51 }
 0x2b0   :  { %v264_v8 = vor.u32 1.1754944e-38, %v263_v3  ;;  %vm262_vm9 = vcmp.eq.f32.partialorder %v261_v5, 8.507059e+37 }
 0x2b1   :  { %v240_v55 = vmul.f32 %v388_v50, %v239_v53 }
 0x2b3   :  { %v241_v58 = vadd.f32 %v388_v50, %v240_v55 }
 0x2b4   :  { %v390_v59 = vpop.eup %389 }
 0x2b5   :  { %v245_v61 = vsel %vm244_vm4, %v388_v50, %v241_v58  ;;  %v253_v62 = vmul.f32 %v390_v59, %v236_v52  ;;  %vm258_vm6 = vweird.f32 %v390_v59 }
 0x2b6   :  { %v250_v63 = vsel %vm247_vm5, %v249_v60, %v245_v61  ;;  %vm259_vm8 = vmor %vm257_vm7, %vm258_vm6 }
 0x2b7   :  { %v251_v1 = vmul.f32 %v384_v46, %v250_v63  ;;  %v254_v2 = vsub.f32 1.0, %v253_v62 }
 0x2b9   :  { %v255_v4 = vmul.f32 %v390_v59, %v254_v2  ;;  %v273_v6 = vadd.f32 %v271_v0, %v251_v1 }
 0x2bb   :  { %v256_v7 = vadd.f32 %v390_v59, %v255_v4  ;;  %275 = vst [vmem:[#allocation2] sm:$0xff] %v273_v6 }
 0x2bd   :  { %v260_v9 = vsel %vm259_vm8, %v390_v59, %v256_v7 }
 0x2be   :  { %v265_v10 = vsel %vm262_vm9, %v264_v8, %v260_v9 }
 0x2bf   :  { %v266_v12 = vmul.f32 %v386_v48, %v265_v10 }
 0x2c1   :  { %v274_v13 = vadd.f32 %v272_v11, %v266_v12 }
 0x2c3   :  { %276 = vst [vmem:[#allocation2 + $0x8] sm:$0xff] %v274_v13 }
 0x2c4   :  { %289 = dma.vmem_to_hbm [thread:$0]  %s282_s8, 256, %s284_s0, [#allocation3], %s418_s24, %s418_s24, %s419_s25  }
 0x2c5   :  { %415 = dma.done.wait [#allocation3], 256  }
 0x2c6   :  { %416 = vsyncadd [#allocation3], 4294967040 }
 0x2c7   :  { %294 = vsyncpa [#allocation3], 1 }

</bundles_post_ra>
